<compile_context>
chip_gen: v7x
topology: tpu7x:2x2x1
jax: 0.10.0
libtpu: 0.0.40
codegen_flags: <defaults>
</compile_context>

<pallas_src>
import numpy as np
import jax
import jax.numpy as jnp
from jax import lax
from jax.experimental import pallas as pl
from jax.experimental.pallas import tpu as pltpu

# ---------------- config (mirrors the PyTorch `config` object) ----------------
BATCH = 2           # batch size (axis 0 of encoder_out)
SEQ = 8             # sequence length (axis 1 of encoder_out)
HIDDEN_SIZE = 32    # config.hidden_size (BERT hidden dim)
GRU_LEN = 16        # config.gru_len
NUM_CAPSULE = 4     # config.Num_capsule
DIM_CAPSULE = 8     # config.Dim_capsule
ROUTINGS = 3        # config.Routings
NUM_CLASSES = 3     # config.num_classes
T_EPSILON = 1e-7    # config.T_epsilon

INPUT_DIM_CAPSULE = GRU_LEN * 2           # 32
CAPS_OUT = NUM_CAPSULE * DIM_CAPSULE      # 32

# GRU axis semantics (faithful to the module): axis 0 of encoder_out is GRU time.
S_TIME = BATCH        # GRU sequence length  == capsule-layer batch
B_GRU = SEQ           # GRU batch            == number of input capsules
NT = S_TIME * B_GRU   # total rows (16)

# ---- weight-slab row layout (all region starts are multiples of 16 for bf16 tiling) ----
ROW_WIH = 0                                  # (2H, 6G)  fused fwd/bwd input projection
ROW_WHH = ROW_WIH + 2 * HIDDEN_SIZE          # (2G, 6G)  block-diagonal recurrence weight
ROW_CAPS = ROW_WHH + 2 * GRU_LEN             # (2G, NC*DC) capsule W
ROW_FC = ROW_CAPS + INPUT_DIM_CAPSULE        # (NC*DC, num_classes) dense W (transposed)
ROW_E = ROW_FC + CAPS_OUT                    # (NC, NC*DC)  expand per-capsule -> DC lanes
ROW_ET = ROW_E + 16                          # (NC*DC, NC)  reduce DC lanes per capsule
ROW_SELBT = ROW_ET + CAPS_OUT                # (S, NT)      per-batch sum over input caps
ROW_SELB = ROW_SELBT + 16                    # (NT, S)      broadcast per-batch rows back
W_SLAB_ROWS = ROW_SELB + NT                  # 240
W_SLAB_COLS = 6 * GRU_LEN                    # 96


# ------------------------------ fused kernel -----------------------------------
def fused_kernel(x_ref, w_ref, b_ref, out_ref):
    G = GRU_LEN
    S = S_TIME
    B = B_GRU
    M = CAPS_OUT
    NC = NUM_CAPSULE
    f32 = jnp.float32
    bf16 = jnp.bfloat16

    # ---- packed-parameter views (static, 16-row-aligned sub-windows of the VMEM slabs) ----
    w_ih = w_ref[ROW_WIH:ROW_WIH + 2 * HIDDEN_SIZE, :]          # (2H, 6G)  bf16
    w_hh = w_ref[ROW_WHH:ROW_WHH + 2 * G, :]                    # (2G, 6G)  bf16
    w_caps = w_ref[ROW_CAPS:ROW_CAPS + 2 * G, 0:M]              # (2G, M)   bf16
    w_fc = w_ref[ROW_FC:ROW_FC + M, 0:NUM_CLASSES]              # (M, 3)    bf16
    E_ = w_ref[ROW_E:ROW_E + NC, 0:M]                           # (NC, M)   0/1
    ET_ = w_ref[ROW_ET:ROW_ET + M, 0:NC]                        # (M, NC)   0/1
    SBT = w_ref[ROW_SELBT:ROW_SELBT + S, 0:NT]                  # (S, NT)   0/1
    SB = w_ref[ROW_SELB:ROW_SELB + NT, 0:S]                     # (NT, S)   0/1

    b_gi = b_ref[0:1, :]               # (1, 6G)  b_ih with b_hh(r,z) folded in (f32)
    b_hn = b_ref[1:2, 0:2 * G]         # (1, 2G)  b_hh of the n gate (inside r*( ))
    b_fc = b_ref[2:3, 0:NUM_CLASSES]   # (1, 3)

    # ---------------- bidirectional GRU ----------------
    # Hoisted fused input projection.  x_ref rows are (step s, gru-batch b); the forward
    # half of the contraction uses x[s] and the backward half x[S-1-s] (built in the
    # wrapper), so row s of `gi` already holds both directions for recurrence step s.
    # Column order is gate-major across directions: [r_f r_b | z_f z_b | n_f n_b].
    gi = jnp.dot(x_ref[...].astype(bf16), w_ih, preferred_element_type=f32) + b_gi
    gi_r = gi[:, 0:2 * G]          # gate split done ONCE in the prologue
    gi_z = gi[:, 2 * G:4 * G]
    gi_n = gi[:, 4 * G:6 * G]

    def cell(s, gh_r, gh_z, gh_n, h_prev):
        # PyTorch GRU cell; r multiplies the full h-side n gate (b_hn included there).
        rows = slice(s * B, (s + 1) * B)   # static sublane row-slice (free)
        r = jax.nn.sigmoid(gi_r[rows] + gh_r)
        z = jax.nn.sigmoid(gi_z[rows] + gh_z)
        n = jnp.tanh(gi_n[rows] + r * (gh_n + b_hn))
        h = (1.0 - z) * n
        if h_prev is not None:
            h = h + z * h_prev
        return h

    # Step 0 peeled: h0 == 0 -> no recurrence matmul at all.
    hs = [cell(0, 0.0, 0.0, 0.0, None)]
    # Fused fwd/bwd recurrence: one (B, 2G) x (2G, 6G) matmul per step (block-diagonal w_hh).
    for s in range(1, S):
        gh = jnp.dot(hs[-1].astype(bf16), w_hh, preferred_element_type=f32)   # (B, 6G)
        hs.append(cell(s, gh[:, 0:2 * G], gh[:, 2 * G:4 * G], gh[:, 4 * G:6 * G], hs[-1]))

    # Assemble the bidirectional GRU output (NT, 2G) without any scratch round-trip:
    # row block t takes forward lanes [0,G) from step t and backward lanes [G,2G) from
    # step S-1-t (a lane-select, no lane movement), then a cheap sublane concat.
    lane = lax.broadcasted_iota(jnp.int32, (B, 2 * G), 1)
    fwd_mask = lane < G
    xcaps = jnp.concatenate(
        [jnp.where(fwd_mask, hs[t], hs[S - 1 - t]) for t in range(S)], axis=0)   # (NT, 2G)

    # ---------------- capsule layer (dynamic routing) ----------------
    # rows of U are (b, i) = (time index, GRU-batch index); columns are m = j*DC + k.
    U = jnp.dot(xcaps.astype(bf16), w_caps, preferred_element_type=f32)          # (NT, M)
    U16 = U.astype(bf16)

    def squash(sv):                                                              # (S, M)
        sq = jnp.dot((sv * sv).astype(bf16), ET_, preferred_element_type=f32)    # (S, NC)
        inv = lax.rsqrt(sq + T_EPSILON)                                          # EUP
        return sv * jnp.dot(inv.astype(bf16), E_, preferred_element_type=f32)

    # Routing iteration 0: logits are all-zero -> uniform coupling c == 1/NC (exact),
    # so the softmax and the (c, E) expansion are folded into a single scale.
    sv = jnp.dot(SBT, U16, preferred_element_type=f32) * (1.0 / NC)              # (S, M)
    v = squash(sv)
    for _ in range(1, ROUTINGS):
        vb = jnp.dot(SB, v.astype(bf16), preferred_element_type=f32)             # (NT, M)
        L = jnp.dot((U * vb).astype(bf16), ET_, preferred_element_type=f32)      # (NT, NC)
        # softmax over the capsule axis j (torch: dim=1 of (batch, NC, N)); EUP reciprocal.
        ex = jnp.exp(L - jnp.max(L, axis=-1, keepdims=True))
        c = ex * pl.reciprocal(jnp.sum(ex, axis=-1, keepdims=True), approx=True)
        cw = jnp.dot(c.astype(bf16), E_, preferred_element_type=f32)             # (NT, M)
        sv = jnp.dot(SBT, (cw * U).astype(bf16), preferred_element_type=f32)     # (S, M)
        v = squash(sv)

    # ---------------- dense head (Dropout(p=0) is identity; v is already the j-major
    # flattened (batch, NC*DC) tensor that Dense_Layer's .view produces) ----------------
    out_ref[...] = jnp.dot(v.astype(bf16), w_fc, preferred_element_type=f32) + b_fc


def model_forward(encoder_out, packed):
    # Wrapper-side layout plumbing (free): 2-D input with the time-reversed copy appended
    # along features, so one in-kernel matmul produces both GRU directions' gate
    # pre-activations, already aligned per recurrence step.
    x_aug = jnp.concatenate([encoder_out, encoder_out[::-1]], axis=-1)
    x_aug = x_aug.reshape(NT, 2 * HIDDEN_SIZE)

    vmem = pl.BlockSpec(memory_space=pltpu.MemorySpace.VMEM)
    # grid=() -> single TensorCore.  At these toy sizes the second v7x core is left idle
    # on purpose; with a real batch, grid the capsule-batch axis with
    # dimension_semantics=("parallel",) instead (never the GRU time axis).
    return pl.pallas_call(
        fused_kernel,
        out_shape=jax.ShapeDtypeStruct((S_TIME, NUM_CLASSES), jnp.float32),
        in_specs=[vmem, vmem, vmem],
        out_specs=vmem,
    )(x_aug, packed['w_slab'], packed['b_slab'])


# ------------------------------ parameters -------------------------------------
def init_params(key):
    """Raw parameters in PyTorch layout/convention (same init as the module)."""
    ks = jax.random.split(key, 8)
    G, H = GRU_LEN, HIDDEN_SIZE

    def xavier_uniform(k, shape):          # shape = (out, in), torch convention
        fan_out, fan_in = shape
        a = float(np.sqrt(6.0 / (fan_in + fan_out)))
        return jax.random.uniform(k, shape, jnp.float32, -a, a)

    p = {
        # GRU weights, torch layout (3G, in), gate order (r, z, n)
        'w_ih_f': xavier_uniform(ks[0], (3 * G, H)),
        'w_hh_f': xavier_uniform(ks[1], (3 * G, G)),
        'w_ih_b': xavier_uniform(ks[2], (3 * G, H)),
        'w_hh_b': xavier_uniform(ks[3], (3 * G, G)),
        # GRU_layer.init_weights(): biases = 0
        'b_ih_f': jnp.zeros((3 * G,), jnp.float32),
        'b_hh_f': jnp.zeros((3 * G,), jnp.float32),
        'b_ih_b': jnp.zeros((3 * G,), jnp.float32),
        'b_hh_b': jnp.zeros((3 * G,), jnp.float32),
    }
    # Capsule W: xavier_normal on torch shape (1, input_dim_capsule, NC*DC) -> stored 2-D
    fan_in = INPUT_DIM_CAPSULE * CAPS_OUT
    fan_out = CAPS_OUT
    std = float(np.sqrt(2.0 / (fan_in + fan_out)))
    p['caps_W'] = std * jax.random.normal(
        ks[4], (INPUT_DIM_CAPSULE, CAPS_OUT), jnp.float32)
    # Dense (nn.Linear(NC*DC, num_classes)) default init
    bound = float(1.0 / np.sqrt(CAPS_OUT))
    p['fc_W'] = jax.random.uniform(ks[5], (NUM_CLASSES, CAPS_OUT), jnp.float32, -bound, bound)
    p['fc_b'] = jax.random.uniform(ks[6], (NUM_CLASSES,), jnp.float32, -bound, bound)
    return p


def pack_params(raw):
    """Host-side packing into two slabs: one bf16 weight slab, one f32 bias slab."""
    G, H, M = GRU_LEN, HIDDEN_SIZE, CAPS_OUT

    def npy(x):
        return np.asarray(jax.device_get(x), np.float32)

    wif, whf = npy(raw['w_ih_f']), npy(raw['w_hh_f'])
    wib, whb = npy(raw['w_ih_b']), npy(raw['w_hh_b'])
    bif, bhf = npy(raw['b_ih_f']), npy(raw['b_hh_f'])
    bib, bhb = npy(raw['b_ih_b']), npy(raw['b_hh_b'])

    # Fused input projection weight ([x | x_reversed] contraction) and block-diagonal
    # recurrence weight; column order gate-major across directions: [r_f r_b|z_f z_b|n_f n_b].
    w_ih_aug = np.zeros((2 * H, 6 * G), np.float32)
    w_hh_blk = np.zeros((2 * G, 6 * G), np.float32)
    b_gi = np.zeros((6 * G,), np.float32)
    for g in range(3):                      # 0=r, 1=z, 2=n
        cf = slice(2 * G * g, 2 * G * g + G)          # forward cols of gate g
        cb = slice(2 * G * g + G, 2 * G * (g + 1))    # backward cols of gate g
        rg = slice(G * g, G * (g + 1))                # torch gate rows
        w_ih_aug[0:H, cf] = wif[rg, :].T
        w_ih_aug[H:2 * H, cb] = wib[rg, :].T
        w_hh_blk[0:G, cf] = whf[rg, :].T
        w_hh_blk[G:2 * G, cb] = whb[rg, :].T
        b_gi[cf] = bif[rg]
        b_gi[cb] = bib[rg]
        if g < 2:                                     # fold b_hh into b_ih for r, z only
            b_gi[cf] += bhf[rg]
            b_gi[cb] += bhb[rg]
    b_hn = np.concatenate([bhf[2 * G:3 * G], bhb[2 * G:3 * G]])

    # Routing grouping constants (0/1; exact in bf16), prebaked into the slab.
    E = (np.arange(M)[None, :] // DIM_CAPSULE
         == np.arange(NUM_CAPSULE)[:, None]).astype(np.float32)          # (NC, M)
    SelBT = (np.arange(NT)[None, :] // B_GRU
             == np.arange(S_TIME)[:, None]).astype(np.float32)           # (S, NT)

    w_slab = np.zeros((W_SLAB_ROWS, W_SLAB_COLS), np.float32)
    w_slab[ROW_WIH:ROW_WIH + 2 * H, :] = w_ih_aug
    w_slab[ROW_WHH:ROW_WHH + 2 * G, :] = w_hh_blk
    w_slab[ROW_CAPS:ROW_CAPS + 2 * G, 0:M] = npy(raw['caps_W'])
    w_slab[ROW_FC:ROW_FC + M, 0:NUM_CLASSES] = npy(raw['fc_W']).T
    w_slab[ROW_E:ROW_E + NUM_CAPSULE, 0:M] = E
    w_slab[ROW_ET:ROW_ET + M, 0:NUM_CAPSULE] = E.T
    w_slab[ROW_SELBT:ROW_SELBT + S_TIME, 0:NT] = SelBT
    w_slab[ROW_SELB:ROW_SELB + NT, 0:S_TIME] = SelBT.T

    b_slab = np.zeros((3, 6 * G), np.float32)
    b_slab[0, :] = b_gi
    b_slab[1, 0:2 * G] = b_hn
    b_slab[2, 0:NUM_CLASSES] = npy(raw['fc_b'])

    return {'w_slab': jnp.asarray(w_slab, jnp.bfloat16),
            'b_slab': jnp.asarray(b_slab, jnp.float32)}


if __name__ == "__main__":
    key = jax.random.PRNGKey(0)
    k_in, k_par = jax.random.split(key)
    raw_params = init_params(k_par)
    packed = pack_params(raw_params)
    encoder_out = jax.random.normal(k_in, (BATCH, SEQ, HIDDEN_SIZE), jnp.float32)

    out = jax.jit(model_forward)(encoder_out, packed)
    out = jax.block_until_ready(out)

    assert out.shape == (BATCH, NUM_CLASSES), out.shape
    assert bool(jnp.all(jnp.isfinite(out)))
    print("KERNEL_OK")
</pallas_src>

<mosaic_0001>
module attributes {stable_mosaic.version = 11 : i64} {
  func.func @fused_kernel(%arg0: memref<16x64xf32, #tpu.memory_space<vmem>>, %arg1: memref<240x96xbf16, #tpu.memory_space<vmem>>, %arg2: memref<3x96xf32, #tpu.memory_space<vmem>>, %arg3: memref<2x3xf32, #tpu.memory_space<vmem>>) attributes {dimension_semantics = [], scalar_prefetch = 0 : i64, scratch_operands = 0 : i64, tpu.core_type = #tpu.core_type<tc>} {
    %c0 = arith.constant 0 : index
    %c0_0 = arith.constant 0 : index
    %0 = vector.load %arg1[%c0, %c0_0] : memref<240x96xbf16, #tpu.memory_space<vmem>>, vector<64x96xbf16>
    %c64 = arith.constant 64 : index
    %c0_1 = arith.constant 0 : index
    %1 = vector.load %arg1[%c64, %c0_1] : memref<240x96xbf16, #tpu.memory_space<vmem>>, vector<32x96xbf16>
    %c96 = arith.constant 96 : index
    %c0_2 = arith.constant 0 : index
    %2 = vector.load %arg1[%c96, %c0_2] : memref<240x96xbf16, #tpu.memory_space<vmem>>, vector<32x32xbf16>
    %c128 = arith.constant 128 : index
    %c0_3 = arith.constant 0 : index
    %3 = vector.load %arg1[%c128, %c0_3] : memref<240x96xbf16, #tpu.memory_space<vmem>>, vector<32x3xbf16>
    %c160 = arith.constant 160 : index
    %c0_4 = arith.constant 0 : index
    %4 = vector.load %arg1[%c160, %c0_4] : memref<240x96xbf16, #tpu.memory_space<vmem>>, vector<4x32xbf16>
    %c176 = arith.constant 176 : index
    %c0_5 = arith.constant 0 : index
    %5 = vector.load %arg1[%c176, %c0_5] : memref<240x96xbf16, #tpu.memory_space<vmem>>, vector<32x4xbf16>
    %c208 = arith.constant 208 : index
    %c0_6 = arith.constant 0 : index
    %6 = vector.load %arg1[%c208, %c0_6] : memref<240x96xbf16, #tpu.memory_space<vmem>>, vector<2x16xbf16>
    %c224 = arith.constant 224 : index
    %c0_7 = arith.constant 0 : index
    %7 = vector.load %arg1[%c224, %c0_7] : memref<240x96xbf16, #tpu.memory_space<vmem>>, vector<16x2xbf16>
    %c0_8 = arith.constant 0 : index
    %c0_9 = arith.constant 0 : index
    %8 = vector.load %arg2[%c0_8, %c0_9] : memref<3x96xf32, #tpu.memory_space<vmem>>, vector<1x96xf32>
    %c1 = arith.constant 1 : index
    %c0_10 = arith.constant 0 : index
    %9 = vector.load %arg2[%c1, %c0_10] : memref<3x96xf32, #tpu.memory_space<vmem>>, vector<1x32xf32>
    %c2 = arith.constant 2 : index
    %c0_11 = arith.constant 0 : index
    %10 = vector.load %arg2[%c2, %c0_11] : memref<3x96xf32, #tpu.memory_space<vmem>>, vector<1x3xf32>
    %c0_12 = arith.constant 0 : index
    %c0_13 = arith.constant 0 : index
    %11 = vector.load %arg0[%c0_12, %c0_13] : memref<16x64xf32, #tpu.memory_space<vmem>>, vector<16x64xf32>
    %12 = arith.truncf %11 : vector<16x64xf32> to vector<16x64xbf16>
    %cst = arith.constant dense<0.000000e+00> : vector<16x96xf32>
    %13 = tpu.matmul %12, %0, %cst {dimension_numbers = #tpu.dot_dimension_numbers<[1], [0], [0], [1], [0, 0, 1, 1], [], []>} : vector<16x64xbf16>, vector<64x96xbf16>, vector<16x96xf32> -> vector<16x96xf32>
    %14 = vector.broadcast %8 : vector<1x96xf32> to vector<16x96xf32>
    %15 = arith.addf %13, %14 : vector<16x96xf32>
    %16 = vector.extract_strided_slice %15 {offsets = [0, 0], sizes = [16, 32], strides = [1, 1]} : vector<16x96xf32> to vector<16x32xf32>
    %17 = vector.extract_strided_slice %15 {offsets = [0, 32], sizes = [16, 32], strides = [1, 1]} : vector<16x96xf32> to vector<16x32xf32>
    %18 = vector.extract_strided_slice %15 {offsets = [0, 64], sizes = [16, 32], strides = [1, 1]} : vector<16x96xf32> to vector<16x32xf32>
    %19 = vector.extract_strided_slice %16 {offsets = [0, 0], sizes = [8, 32], strides = [1, 1]} : vector<16x32xf32> to vector<8x32xf32>
    %cst_14 = arith.constant 0.000000e+00 : f32
    %20 = vector.broadcast %cst_14 : f32 to vector<8x32xf32>
    %21 = arith.addf %19, %20 : vector<8x32xf32>
    %22 = arith.negf %21 : vector<8x32xf32>
    %23 = math.exp %22 : vector<8x32xf32>
    %cst_15 = arith.constant 1.000000e+00 : f32
    %24 = vector.broadcast %cst_15 : f32 to vector<8x32xf32>
    %25 = arith.addf %24, %23 : vector<8x32xf32>
    %26 = arith.divf %24, %25 : vector<8x32xf32>
    %27 = vector.extract_strided_slice %17 {offsets = [0, 0], sizes = [8, 32], strides = [1, 1]} : vector<16x32xf32> to vector<8x32xf32>
    %cst_16 = arith.constant 0.000000e+00 : f32
    %28 = vector.broadcast %cst_16 : f32 to vector<8x32xf32>
    %29 = arith.addf %27, %28 : vector<8x32xf32>
    %30 = arith.negf %29 : vector<8x32xf32>
    %31 = math.exp %30 : vector<8x32xf32>
    %cst_17 = arith.constant 1.000000e+00 : f32
    %32 = vector.broadcast %cst_17 : f32 to vector<8x32xf32>
    %33 = arith.addf %32, %31 : vector<8x32xf32>
    %34 = arith.divf %32, %33 : vector<8x32xf32>
    %35 = vector.extract_strided_slice %18 {offsets = [0, 0], sizes = [8, 32], strides = [1, 1]} : vector<16x32xf32> to vector<8x32xf32>
    %cst_18 = arith.constant 0.000000e+00 : f32
    %36 = vector.broadcast %cst_18 : f32 to vector<1x32xf32>
    %37 = arith.addf %36, %9 : vector<1x32xf32>
    %38 = vector.broadcast %37 : vector<1x32xf32> to vector<8x32xf32>
    %39 = arith.mulf %26, %38 : vector<8x32xf32>
    %40 = arith.addf %35, %39 : vector<8x32xf32>
    %41 = math.tanh %40 : vector<8x32xf32>
    %cst_19 = arith.constant 1.000000e+00 : f32
    %42 = vector.broadcast %cst_19 : f32 to vector<8x32xf32>
    %43 = arith.subf %42, %34 : vector<8x32xf32>
    %44 = arith.mulf %43, %41 : vector<8x32xf32>
    %45 = arith.truncf %44 : vector<8x32xf32> to vector<8x32xbf16>
    %cst_20 = arith.constant dense<0.000000e+00> : vector<8x96xf32>
    %46 = tpu.matmul %45, %1, %cst_20 {dimension_numbers = #tpu.dot_dimension_numbers<[1], [0], [0], [1], [0, 0, 1, 1], [], []>} : vector<8x32xbf16>, vector<32x96xbf16>, vector<8x96xf32> -> vector<8x96xf32>
    %47 = vector.extract_strided_slice %46 {offsets = [0, 0], sizes = [8, 32], strides = [1, 1]} : vector<8x96xf32> to vector<8x32xf32>
    %48 = vector.extract_strided_slice %46 {offsets = [0, 32], sizes = [8, 32], strides = [1, 1]} : vector<8x96xf32> to vector<8x32xf32>
    %49 = vector.extract_strided_slice %46 {offsets = [0, 64], sizes = [8, 32], strides = [1, 1]} : vector<8x96xf32> to vector<8x32xf32>
    %50 = vector.extract_strided_slice %16 {offsets = [8, 0], sizes = [8, 32], strides = [1, 1]} : vector<16x32xf32> to vector<8x32xf32>
    %51 = arith.addf %50, %47 : vector<8x32xf32>
    %52 = arith.negf %51 : vector<8x32xf32>
    %53 = math.exp %52 : vector<8x32xf32>
    %cst_21 = arith.constant 1.000000e+00 : f32
    %54 = vector.broadcast %cst_21 : f32 to vector<8x32xf32>
    %55 = arith.addf %54, %53 : vector<8x32xf32>
    %56 = arith.divf %54, %55 : vector<8x32xf32>
    %57 = vector.extract_strided_slice %17 {offsets = [8, 0], sizes = [8, 32], strides = [1, 1]} : vector<16x32xf32> to vector<8x32xf32>
    %58 = arith.addf %57, %48 : vector<8x32xf32>
    %59 = arith.negf %58 : vector<8x32xf32>
    %60 = math.exp %59 : vector<8x32xf32>
    %cst_22 = arith.constant 1.000000e+00 : f32
    %61 = vector.broadcast %cst_22 : f32 to vector<8x32xf32>
    %62 = arith.addf %61, %60 : vector<8x32xf32>
    %63 = arith.divf %61, %62 : vector<8x32xf32>
    %64 = vector.extract_strided_slice %18 {offsets = [8, 0], sizes = [8, 32], strides = [1, 1]} : vector<16x32xf32> to vector<8x32xf32>
    %65 = vector.broadcast %9 : vector<1x32xf32> to vector<8x32xf32>
    %66 = arith.addf %49, %65 : vector<8x32xf32>
    %67 = arith.mulf %56, %66 : vector<8x32xf32>
    %68 = arith.addf %64, %67 : vector<8x32xf32>
    %69 = math.tanh %68 : vector<8x32xf32>
    %cst_23 = arith.constant 1.000000e+00 : f32
    %70 = vector.broadcast %cst_23 : f32 to vector<8x32xf32>
    %71 = arith.subf %70, %63 : vector<8x32xf32>
    %72 = arith.mulf %71, %69 : vector<8x32xf32>
    %73 = arith.mulf %63, %44 : vector<8x32xf32>
    %74 = arith.addf %72, %73 : vector<8x32xf32>
    %75 = tpu.iota {dimensions = array<i32: 1>} : vector<8x32xi32>
    %c16_i32 = arith.constant 16 : i32
    %76 = vector.broadcast %c16_i32 : i32 to vector<8x32xi32>
    %77 = arith.cmpi slt, %75, %76 : vector<8x32xi32>
    %78 = arith.select %77, %44, %74 : vector<8x32xi1>, vector<8x32xf32>
    %79 = arith.select %77, %74, %44 : vector<8x32xi1>, vector<8x32xf32>
    %80 = tpu.concatenate %78, %79 in 0 : vector<8x32xf32>, vector<8x32xf32> -> vector<16x32xf32>
    %81 = arith.truncf %80 : vector<16x32xf32> to vector<16x32xbf16>
    %cst_24 = arith.constant dense<0.000000e+00> : vector<16x32xf32>
    %82 = tpu.matmul %81, %2, %cst_24 {dimension_numbers = #tpu.dot_dimension_numbers<[1], [0], [0], [1], [0, 0, 1, 1], [], []>} : vector<16x32xbf16>, vector<32x32xbf16>, vector<16x32xf32> -> vector<16x32xf32>
    %83 = arith.truncf %82 : vector<16x32xf32> to vector<16x32xbf16>
    %cst_25 = arith.constant dense<0.000000e+00> : vector<2x32xf32>
    %84 = tpu.matmul %6, %83, %cst_25 {dimension_numbers = #tpu.dot_dimension_numbers<[1], [0], [0], [1], [0, 0, 1, 1], [], []>} : vector<2x16xbf16>, vector<16x32xbf16>, vector<2x32xf32> -> vector<2x32xf32>
    %cst_26 = arith.constant 2.500000e-01 : f32
    %85 = vector.broadcast %cst_26 : f32 to vector<2x32xf32>
    %86 = arith.mulf %84, %85 : vector<2x32xf32>
    %87 = arith.mulf %86, %86 : vector<2x32xf32>
    %88 = arith.truncf %87 : vector<2x32xf32> to vector<2x32xbf16>
    %cst_27 = arith.constant dense<0.000000e+00> : vector<2x4xf32>
    %89 = tpu.matmul %88, %5, %cst_27 {dimension_numbers = #tpu.dot_dimension_numbers<[1], [0], [0], [1], [0, 0, 1, 1], [], []>} : vector<2x32xbf16>, vector<32x4xbf16>, vector<2x4xf32> -> vector<2x4xf32>
    %cst_28 = arith.constant 1.000000e-07 : f32
    %90 = vector.broadcast %cst_28 : f32 to vector<2x4xf32>
    %91 = arith.addf %89, %90 : vector<2x4xf32>
    %92 = math.rsqrt %91 : vector<2x4xf32>
    %93 = arith.truncf %92 : vector<2x4xf32> to vector<2x4xbf16>
    %cst_29 = arith.constant dense<0.000000e+00> : vector<2x32xf32>
    %94 = tpu.matmul %93, %4, %cst_29 {dimension_numbers = #tpu.dot_dimension_numbers<[1], [0], [0], [1], [0, 0, 1, 1], [], []>} : vector<2x4xbf16>, vector<4x32xbf16>, vector<2x32xf32> -> vector<2x32xf32>
    %95 = arith.mulf %86, %94 : vector<2x32xf32>
    %96 = arith.truncf %95 : vector<2x32xf32> to vector<2x32xbf16>
    %cst_30 = arith.constant dense<0.000000e+00> : vector<16x32xf32>
    %97 = tpu.matmul %7, %96, %cst_30 {dimension_numbers = #tpu.dot_dimension_numbers<[1], [0], [0], [1], [0, 0, 1, 1], [], []>} : vector<16x2xbf16>, vector<2x32xbf16>, vector<16x32xf32> -> vector<16x32xf32>
    %98 = arith.mulf %82, %97 : vector<16x32xf32>
    %99 = arith.truncf %98 : vector<16x32xf32> to vector<16x32xbf16>
    %cst_31 = arith.constant dense<0.000000e+00> : vector<16x4xf32>
    %100 = tpu.matmul %99, %5, %cst_31 {dimension_numbers = #tpu.dot_dimension_numbers<[1], [0], [0], [1], [0, 0, 1, 1], [], []>} : vector<16x32xbf16>, vector<32x4xbf16>, vector<16x4xf32> -> vector<16x4xf32>
    %cst_32 = arith.constant dense<0xFF800000> : vector<16xf32>
    %101 = vector.multi_reduction <maximumf>, %100, %cst_32 [1] : vector<16x4xf32> to vector<16xf32>
    %102 = vector.shape_cast %101 : vector<16xf32> to vector<16x1xf32>
    %103 = vector.broadcast %102 : vector<16x1xf32> to vector<16x4xf32>
    %104 = arith.subf %100, %103 : vector<16x4xf32>
    %105 = math.exp %104 : vector<16x4xf32>
    %cst_33 = arith.constant dense<0.000000e+00> : vector<16xf32>
    %106 = vector.multi_reduction <add>, %105, %cst_33 [1] : vector<16x4xf32> to vector<16xf32>
    %107 = vector.shape_cast %106 : vector<16xf32> to vector<16x1xf32>
    %108 = tpu.reciprocal %107 {approx = true} : vector<16x1xf32> -> vector<16x1xf32>
    %109 = vector.broadcast %108 : vector<16x1xf32> to vector<16x4xf32>
    %110 = arith.mulf %105, %109 : vector<16x4xf32>
    %111 = arith.truncf %110 : vector<16x4xf32> to vector<16x4xbf16>
    %cst_34 = arith.constant dense<0.000000e+00> : vector<16x32xf32>
    %112 = tpu.matmul %111, %4, %cst_34 {dimension_numbers = #tpu.dot_dimension_numbers<[1], [0], [0], [1], [0, 0, 1, 1], [], []>} : vector<16x4xbf16>, vector<4x32xbf16>, vector<16x32xf32> -> vector<16x32xf32>
    %113 = arith.mulf %112, %82 : vector<16x32xf32>
    %114 = arith.truncf %113 : vector<16x32xf32> to vector<16x32xbf16>
    %cst_35 = arith.constant dense<0.000000e+00> : vector<2x32xf32>
    %115 = tpu.matmul %6, %114, %cst_35 {dimension_numbers = #tpu.dot_dimension_numbers<[1], [0], [0], [1], [0, 0, 1, 1], [], []>} : vector<2x16xbf16>, vector<16x32xbf16>, vector<2x32xf32> -> vector<2x32xf32>
    %116 = arith.mulf %115, %115 : vector<2x32xf32>
    %117 = arith.truncf %116 : vector<2x32xf32> to vector<2x32xbf16>
    %cst_36 = arith.constant dense<0.000000e+00> : vector<2x4xf32>
    %118 = tpu.matmul %117, %5, %cst_36 {dimension_numbers = #tpu.dot_dimension_numbers<[1], [0], [0], [1], [0, 0, 1, 1], [], []>} : vector<2x32xbf16>, vector<32x4xbf16>, vector<2x4xf32> -> vector<2x4xf32>
    %cst_37 = arith.constant 1.000000e-07 : f32
    %119 = vector.broadcast %cst_37 : f32 to vector<2x4xf32>
    %120 = arith.addf %118, %119 : vector<2x4xf32>
    %121 = math.rsqrt %120 : vector<2x4xf32>
    %122 = arith.truncf %121 : vector<2x4xf32> to vector<2x4xbf16>
    %cst_38 = arith.constant dense<0.000000e+00> : vector<2x32xf32>
    %123 = tpu.matmul %122, %4, %cst_38 {dimension_numbers = #tpu.dot_dimension_numbers<[1], [0], [0], [1], [0, 0, 1, 1], [], []>} : vector<2x4xbf16>, vector<4x32xbf16>, vector<2x32xf32> -> vector<2x32xf32>
    %124 = arith.mulf %115, %123 : vector<2x32xf32>
    %125 = arith.truncf %124 : vector<2x32xf32> to vector<2x32xbf16>
    %cst_39 = arith.constant dense<0.000000e+00> : vector<16x32xf32>
    %126 = tpu.matmul %7, %125, %cst_39 {dimension_numbers = #tpu.dot_dimension_numbers<[1], [0], [0], [1], [0, 0, 1, 1], [], []>} : vector<16x2xbf16>, vector<2x32xbf16>, vector<16x32xf32> -> vector<16x32xf32>
    %127 = arith.mulf %82, %126 : vector<16x32xf32>
    %128 = arith.truncf %127 : vector<16x32xf32> to vector<16x32xbf16>
    %cst_40 = arith.constant dense<0.000000e+00> : vector<16x4xf32>
    %129 = tpu.matmul %128, %5, %cst_40 {dimension_numbers = #tpu.dot_dimension_numbers<[1], [0], [0], [1], [0, 0, 1, 1], [], []>} : vector<16x32xbf16>, vector<32x4xbf16>, vector<16x4xf32> -> vector<16x4xf32>
    %cst_41 = arith.constant dense<0xFF800000> : vector<16xf32>
    %130 = vector.multi_reduction <maximumf>, %129, %cst_41 [1] : vector<16x4xf32> to vector<16xf32>
    %131 = vector.shape_cast %130 : vector<16xf32> to vector<16x1xf32>
    %132 = vector.broadcast %131 : vector<16x1xf32> to vector<16x4xf32>
    %133 = arith.subf %129, %132 : vector<16x4xf32>
    %134 = math.exp %133 : vector<16x4xf32>
    %cst_42 = arith.constant dense<0.000000e+00> : vector<16xf32>
    %135 = vector.multi_reduction <add>, %134, %cst_42 [1] : vector<16x4xf32> to vector<16xf32>
    %136 = vector.shape_cast %135 : vector<16xf32> to vector<16x1xf32>
    %137 = tpu.reciprocal %136 {approx = true} : vector<16x1xf32> -> vector<16x1xf32>
    %138 = vector.broadcast %137 : vector<16x1xf32> to vector<16x4xf32>
    %139 = arith.mulf %134, %138 : vector<16x4xf32>
    %140 = arith.truncf %139 : vector<16x4xf32> to vector<16x4xbf16>
    %cst_43 = arith.constant dense<0.000000e+00> : vector<16x32xf32>
    %141 = tpu.matmul %140, %4, %cst_43 {dimension_numbers = #tpu.dot_dimension_numbers<[1], [0], [0], [1], [0, 0, 1, 1], [], []>} : vector<16x4xbf16>, vector<4x32xbf16>, vector<16x32xf32> -> vector<16x32xf32>
    %142 = arith.mulf %141, %82 : vector<16x32xf32>
    %143 = arith.truncf %142 : vector<16x32xf32> to vector<16x32xbf16>
    %cst_44 = arith.constant dense<0.000000e+00> : vector<2x32xf32>
    %144 = tpu.matmul %6, %143, %cst_44 {dimension_numbers = #tpu.dot_dimension_numbers<[1], [0], [0], [1], [0, 0, 1, 1], [], []>} : vector<2x16xbf16>, vector<16x32xbf16>, vector<2x32xf32> -> vector<2x32xf32>
    %145 = arith.mulf %144, %144 : vector<2x32xf32>
    %146 = arith.truncf %145 : vector<2x32xf32> to vector<2x32xbf16>
    %cst_45 = arith.constant dense<0.000000e+00> : vector<2x4xf32>
    %147 = tpu.matmul %146, %5, %cst_45 {dimension_numbers = #tpu.dot_dimension_numbers<[1], [0], [0], [1], [0, 0, 1, 1], [], []>} : vector<2x32xbf16>, vector<32x4xbf16>, vector<2x4xf32> -> vector<2x4xf32>
    %cst_46 = arith.constant 1.000000e-07 : f32
    %148 = vector.broadcast %cst_46 : f32 to vector<2x4xf32>
    %149 = arith.addf %147, %148 : vector<2x4xf32>
    %150 = math.rsqrt %149 : vector<2x4xf32>
    %151 = arith.truncf %150 : vector<2x4xf32> to vector<2x4xbf16>
    %cst_47 = arith.constant dense<0.000000e+00> : vector<2x32xf32>
    %152 = tpu.matmul %151, %4, %cst_47 {dimension_numbers = #tpu.dot_dimension_numbers<[1], [0], [0], [1], [0, 0, 1, 1], [], []>} : vector<2x4xbf16>, vector<4x32xbf16>, vector<2x32xf32> -> vector<2x32xf32>
    %153 = arith.mulf %144, %152 : vector<2x32xf32>
    %154 = arith.truncf %153 : vector<2x32xf32> to vector<2x32xbf16>
    %cst_48 = arith.constant dense<0.000000e+00> : vector<2x3xf32>
    %155 = tpu.matmul %154, %3, %cst_48 {dimension_numbers = #tpu.dot_dimension_numbers<[1], [0], [0], [1], [0, 0, 1, 1], [], []>} : vector<2x32xbf16>, vector<32x3xbf16>, vector<2x3xf32> -> vector<2x3xf32>
    %156 = vector.broadcast %10 : vector<1x3xf32> to vector<2x3xf32>
    %157 = arith.addf %155, %156 : vector<2x3xf32>
    %c0_49 = arith.constant 0 : index
    %c0_50 = arith.constant 0 : index
    %158 = vector.load %arg3[%c0_49, %c0_50] : memref<2x3xf32, #tpu.memory_space<vmem>>, vector<2x3xf32>
    tpu.vector_store %arg3[%c0_49, %c0_50], %157 {strides = array<i32>} : memref<2x3xf32, #tpu.memory_space<vmem>>, vector<2x3xf32>,
    return
  }
}

</mosaic_0001>

<bundles_post_ra>
// kernel: model_forward.1
= control target key start
LH: loop header
LB: loop body
LE: loop exit
PB: predicated region body
PF: predicated region fallthrough
CT: control target
= control target key end

     0   :  { %v1442_v1 = vmov 0.0   ;;  %vm1443_vm0 = vmmov 0   ;;  %s1687_s0 = inlined_call_operand.vmem [shape: f32[16,64], index: 0, kind: input, shape index: {}]   ;;  %s1688_s1 = inlined_call_operand.vmem [shape: bf16[240,96], index: 1, kind: input, shape index: {}]   ;;  %s1689_s2 = inlined_call_operand.vmem [shape: f32[3,96], index: 2, kind: input, shape index: {}]   ;;  %s1690_s3 = inlined_call_operand.hbm [shape: f32[2,3], index: 3, kind: output, shape index: {}]  }
   0x1   :  { %v1371_v0 = vld [vmem:[%s1688_s1] sm:$0xff]   ;;  %1225 = vmatprep.subr.bf16.mxu0 %v1442_v1  ;;  %1237 = vmatprep.subr.bf16.mxu1 %v1442_v1  ;;  %v1372_v2 = vld [vmem:[%s1688_s1 + $0x8] sm:$0xff]   ;;  %v1373_v3 = vld [vmem:[%s1688_s1 + $0x10] sm:$0xff]  }
   0x2   :  { %1226 = vmatpush3.bf16.msra.mxu0 %v1371_v0  ;;  %1233 = vmatprep.mubr.msk.bf16.mxu0 %vm1443_vm0, %v1442_v1  ;;  %v1374_v4 = vld [vmem:[%s1688_s1 + $0x18] sm:$0xff]   ;;  %v47_v5 = vld [vmem:[%s1687_s0] sm:$0xff]  ;;  %v48_v6 = vld [vmem:[%s1687_s0 + $0x8] sm:$0xff] }
   0x3   :  { %1227 = vmatprep.subr.bf16.mxu0 %v1442_v1  ;;  %1241 = vmatprep.mubr.msk.bf16.mxu1 %vm1443_vm0, %v1442_v1 }
   0x6   :  { %1228 = vmatpush3.bf16.msra.mxu0 %v1372_v2 }
   0x7   :  { %1229 = vmatprep.subr.bf16.mxu0 %v1442_v1 }
   0xa   :  { %1230 = vmatpush3.bf16.msra.mxu0 %v1373_v3 }
   0xb   :  { %1231 = vmatprep.subr.bf16.mxu0 %v1442_v1 }
   0xc   :  { %8 = vsyncpa [#allocation3], 0  ;;  %v49_v7 = vpack.c.bf16 %v48_v6, %v47_v5  ;;  %vm78_vm1 = vcmask 523264   ;;  %v1139_v8 = vld [vmem:[%s1689_s2] ss:$0 sm:$0xff]  ;;  %s1444_s27 = smov 64   ;;  %v131_v55 = vlaneseq }
   0xd   :  { %v1175_v18 = vld [vmem:[%s1689_s2 + $0x1] ss:$0 sm:$0xff]  ;;  %v1376_v24 = vld [vmem:[%s1688_s1 + $0x28] sm:$0xff]   ;;  %s1445_s5 = smov 96   ;;  %vm164_vm2 = vcmask 261120   ;;  %v1377_v46 = vld [vmem:[%s1688_s1 + $0x30] sm:$0xff]  }
   0xe   :  { %1232 = vmatpush3.bf16.msra.mxu0 %v1374_v4  ;;  %v1375_v23 = vld [vmem:[%s1688_s1 + $0x20] sm:$0xff]   ;;  %v1378_v48 = vld [vmem:[%s1688_s1 + $0x38] sm:$0xff]   ;;  %v244_v56 = vand.u32 127, %v131_v55  ;;  %v1542_v5 = vld [vmem:[%s1688_s1 + $0x68] sm:$0x1]  ;;  %vm314_vm4 = vcmask 130048  }
   0xf   :  { %1253 = vmatprep.subr.bf16.mxu0 %v1442_v1  ;;  %1238 = vmatpush3.bf16.msra.mxu1 %v1375_v23  ;;  %v1552_v6 = vld [vmem:[%s1688_s1 + $0x58] sm:$0xff]   ;;  %vm422_vm5 = vcmask 1041408   ;;  %vm418_vm6 = vcmask 31744   ;;  %vm477_vm7 = vcmask 1040384   ;;  %vm473_vm8 = vcmask 15360   ;;  %s1446_s0 = smov [#allocation2]  }
  0x10   :  { %1239 = vmatprep.subr.bf16.mxu1 %v1442_v1  ;;  %vm245_vm3 = vcmp.lt.s32.totalorder %v244_v56, 16  ;;  %s1131_s26 = sshll.u32 %s1446_s0, 4  ;;  %vm1123_vm9 = vcmask 17408   ;;  %s1132_s26 = int_to_ptr.vmem [resolvable:$true] %s1131_s26 }
  0x11   :  { %1234 = vmatmul.mubr.msk.bf16.vlgmr.msra.gmra.mrb[0].mxu0 %vm78_vm1, %v49_v7  ;;  %v1559_v7 = vld [vmem:[%s1688_s1 + $0x60] sm:$0xff]   ;;  %p1423_p1 = scmp.lt.s32.totalorder %s1132_s26, %s1132_s26 }
  0x12   :  { %1255 = vmatprep.mubr.msk.bf16.mxu0 %vm1443_vm0, %v1442_v1 }
  0x13   :  { %1240 = vmatpush3.bf16.msra.mxu1 %v1376_v24 }
  0x14   :  { %1245 = vmatprep.subr.bf16.mxu1 %v1442_v1 }
  0xe4   :  { %v116_v9 = vpop.f32.mrb[0].mxu0 }
  0xe5   :  { %v117_v10 = vadd.f32 %v1139_v8, %v116_v9  ;;  %v1235_v11 = vpop.f32.mrb[1].mxu0 }
  0xe6   :  { %v119_v12 = vpop.f32.mrb[2].mxu0 }
  0xe7   :  { %v1145_v13 = vmul.f32 -1.442695, %v117_v10  ;;  %v120_v14 = vadd.f32 %v1139_v8, %v119_v12  ;;  %v1236_v15 = vpop.f32.mrb[3].mxu0 }
  0xe8   :  { %v36_v15 = vld [vmem:[%s1688_s1 + $0x50] sm:$0x3] }
  0xe9   :  { %1384 = vpow2.f32 %v1145_v13 }
  0xf3   :  { %v1385_v16 = vpop.eup %1384 }
  0xf4   :  { %v127_v17 = vadd.f32 1.0, %v1385_v16  ;;  %v1569_v16 = vsel %vm422_vm5, %v36_v15, 0 }
  0xf6   :  { %1386 = vrcp.f32 %v127_v17 }
 0x100   :  { %v1387_v19 = vpop.eup %1386 }
 0x101   :  { %v135_v20 = vmul.f32 %v1387_v19, %v1175_v18  ;;  %v142_v26 = vsub.f32 1.0, %v1387_v19 }
 0x103   :  { %137 = vrot.lane.b32.xlu0 %v135_v20, %s1444_s27 }
 0x175   :  { %v138_v21 = vpop.permute.xlu0 %137 }
 0x176   :  { %v140_v22 = vadd.f32 %v138_v21, %v117_v10 }
 0x178   :  { %1388 = vtanh.f32 %v140_v22 }
 0x182   :  { %v1389_v25 = vpop.eup %1388 }
 0x183   :  { %144 = vrot.lane.b32.xlu0 %v1389_v25, %s1445_s5 }
 0x1f5   :  { %v145_v27 = vpop.permute.xlu0 %144 }
 0x1f6   :  { %v147_v28 = vmul.f32 %v145_v27, %v142_v26 }
 0x1f8   :  { %v148_v29 = vpack.c.bf16 %v147_v28, %v147_v28 }
 0x1fa   :  { %150 = vrot.lane.b32.xlu1 %v148_v29, %s1445_s5 }
 0x1fe   :  { %220 = vrot.lane.b32.xlu1 %v1175_v18, %s1444_s27 }
 0x26c   :  { %v151_v30 = vpop.permute.xlu1 %150 }
 0x26d   :  { %1242 = vmatmul.mubr.msk.bf16.vlgmr.msra.gmra.mrb[0].mxu1 %vm164_vm2, %v151_v30 }
 0x26e   :  { %1249 = vmatprep.mubr.msk.bf16.mxu1 %vm1443_vm0, %v1442_v1  ;;  %1246 = vmatpush3.bf16.msra.mxu1 %v1377_v46 }
 0x26f   :  { %1247 = vmatprep.subr.bf16.mxu1 %v1442_v1 }
 0x270   :  { %v221_v31 = vpop.permute.xlu1 %220 }
 0x272   :  { %1248 = vmatpush3.bf16.msra.mxu1 %v1378_v48 }
 0x273   :  { %1259 = vmatprep.subr.bf16.mxu1 %v1442_v1 }
 0x340   :  { %v202_v32 = vpop.f32.mrb[0].mxu1 }
 0x341   :  { %v223_v33 = vadd.f32 %v221_v31, %v202_v32  ;;  %v1243_v34 = vpop.f32.mrb[1].mxu1  ;;  %v208_v37 = vadd.f32 %v202_v32, %v120_v14  ;;  %v1584_v31 = vld [vmem:[%s1688_s1 + $0x70] sm:$0xff]  }
 0x342   :  { %v205_v35 = vpop.f32.mrb[2].mxu1 }
 0x343   :  { %v1244_v36 = vpop.f32.mrb[3].mxu1  ;;  %225 = vrot.lane.b32.xlu0 %v223_v33, %s1444_s27  ;;  %v1149_v38 = vmul.f32 -1.442695, %v208_v37 }
 0x345   :  { %1390 = vpow2.f32 %v1149_v38 }
 0x34f   :  { %v1391_v39 = vpop.eup %1390 }
 0x350   :  { %v212_v40 = vadd.f32 1.0, %v1391_v39 }
 0x352   :  { %1392 = vrcp.f32 %v212_v40 }
 0x35c   :  { %v1393_v41 = vpop.eup %1392 }
 0x35d   :  { %v235_v49 = vsub.f32 1.0, %v1393_v41  ;;  %v241_v51 = vmul.f32 %v1393_v41, %v147_v28 }
 0x3b5   :  { %v226_v42 = vpop.permute.xlu0 %225 }
 0x3b6   :  { %v228_v43 = vmul.f32 %v1393_v41, %v226_v42 }
 0x3b8   :  { %230 = vrot.lane.b32.xlu1 %v228_v43, %s1444_s27 }
 0x42a   :  { %v231_v44 = vpop.permute.xlu1 %230 }
 0x42b   :  { %v233_v45 = vadd.f32 %v231_v44, %v120_v14 }
 0x42d   :  { %1394 = vtanh.f32 %v233_v45 }
 0x437   :  { %v1395_v47 = vpop.eup %1394 }
 0x438   :  { %237 = vrot.lane.b32.xlu0 %v1395_v47, %s1445_s5 }
 0x4aa   :  { %v238_v50 = vpop.permute.xlu0 %237 }
 0x4ab   :  { %v240_v52 = vmul.f32 %v238_v50, %v235_v49 }
 0x4ad   :  { %v242_v53 = vadd.f32 %v241_v51, %v240_v52 }
 0x4af   :  { %v1366_v54 = vpack.i.bf16 %v242_v53, %v147_v28 }
 0x4b1   :  { %1367 = vrot.lane.b32.xlu1 %v1366_v54, %s1445_s5 }
 0x523   :  { %v1368_v57 = vpop.permute.xlu1 %1367 }
 0x524   :  { %v1370_v58 = vunpack.i.h.bf16 %v1368_v57  ;;  %v1369_v59 = vunpack.i.l.bf16 %v1368_v57 }
 0x526   :  { %v254_v60 = vsel %vm245_vm3, %v1369_v59, %v1370_v58  ;;  %v255_v61 = vsel %vm245_vm3, %v1370_v58, %v1369_v59 }
 0x527   :  { %v256_v62 = vpack.c.bf16 %v255_v61, %v254_v60 }
 0x529   :  { %1250 = vmatmul.mubr.msk.bf16.vlgmr.msra.gmra.mrb[4].mxu1 %vm164_vm2, %v256_v62 }
 0x52a   :  { %1263 = vmatprep.mubr.msk.bf16.mxu1 %vm1443_vm0, %v1442_v1  ;;  %1260 = vmatpush3.bf16.msra.mxu1 %v1552_v6 }
 0x52b   :  { %1261 = vmatprep.subr.bf16.mxu1 %v1442_v1 }
 0x52e   :  { %1262 = vmatpush3.bf16.msra.mxu1 %v1559_v7 }
 0x52f   :  { %1273 = vmatprep.subr.bf16.mxu1 %v1442_v1 }
 0x5fc   :  { %v1533_v63 = vpop.f32.mrb[4].mxu1 }
 0x5fd   :  { %v1251_v0 = vpop.f32.mrb[5].mxu1 }
 0x5fe   :  { %v1535_v2 = vpop.f32.mrb[6].mxu1 }
 0x5ff   :  { %v1252_v3 = vpop.f32.mrb[7].mxu1  ;;  %v313_v4 = vpack.c.bf16 %v1535_v2, %v1533_v63 }
 0x601   :  { %1254 = vmatpush3.bf16.msra.mxu0 %v313_v4 }
 0x602   :  { %1267 = vmatprep.subr.bf16.mxu0 %v1442_v1 }
 0x604   :  { %1256 = vmatmul.mubr.msk.bf16.vlgmr.msra.gmra.mrb[4].mxu0 %vm314_vm4, %v1542_v5 }
 0x605   :  { %1269 = vmatprep.mubr.msk.bf16.mxu0 %vm1443_vm0, %v1442_v1  ;;  %1268 = vmatpush3.bf16.msra.mxu0 %v1569_v16 }
 0x606   :  { %1279 = vmatprep.subr.bf16.mxu0 %v1442_v1 }
 0x6d7   :  { %v352_v8 = vpop.f32.mrb[4].mxu0 }
 0x6d8   :  { %v358_v9 = vmul.f32 0.25, %v352_v8  ;;  %v1257_v10 = vpop.f32.mrb[5].mxu0 }
 0x6d9   :  { %v355_v11 = vpop.f32.mrb[6].mxu0 }
 0x6da   :  { %v359_v12 = vmul.f32 %v358_v9, %v358_v9  ;;  %v1258_v13 = vpop.f32.mrb[7].mxu0 }
 0x6dc   :  { %v360_v14 = vpack.c.bf16 %v359_v12, %v359_v12 }
 0x6de   :  { %1264 = vmatmul.mubr.msk.bf16.vlgmr.msra.gmra.mrb[8].mxu1 %vm164_vm2, %v360_v14 }
 0x6df   :  { %1275 = vmatprep.mubr.msk.bf16.mxu1 %vm1443_vm0, %v1442_v1 }
 0x7b1   :  { %v410_v17 = vpop.f32.mrb[8].mxu1 }
 0x7b2   :  { %v411_v18 = vadd.f32 1e-07, %v410_v17  ;;  %v1265_v19 = vpop.f32.mrb[9].mxu1 }
 0x7b3   :  { %v413_v20 = vpop.f32.mrb[10].mxu1 }
 0x7b4   :  { %1396 = vrsqrt.f32 %v411_v18  ;;  %v1266_v21 = vpop.f32.mrb[11].mxu1 }
 0x7be   :  { %v1397_v22 = vpop.eup %1396 }
 0x7bf   :  { %v417_v23 = vpack.c.bf16 %v1397_v22, %v1397_v22 }
 0x7c1   :  { %1270 = vmatmul.mubr.msk.bf16.vlgmr.msra.gmra.mrb[8].mxu0 %vm418_vm6, %v417_v23 }
 0x7c2   :  { %1280 = vmatpush3.bf16.msra.mxu0 %v1552_v6  ;;  %1283 = vmatprep.mubr.msk.bf16.mxu0 %vm1443_vm0, %v1442_v1 }
 0x7c3   :  { %1281 = vmatprep.subr.bf16.mxu0 %v1442_v1 }
 0x7c6   :  { %1282 = vmatpush3.bf16.msra.mxu0 %v1559_v7 }
 0x7c7   :  { %1293 = vmatprep.subr.bf16.mxu0 %v1442_v1 }
 0x894   :  { %v460_v24 = vpop.f32.mrb[8].mxu0 }
 0x895   :  { %v466_v25 = vmul.f32 %v460_v24, %v358_v9  ;;  %v1271_v26 = vpop.f32.mrb[9].mxu0 }
 0x896   :  { %v463_v27 = vpop.f32.mrb[10].mxu0 }
 0x897   :  { %v467_v28 = vpack.c.bf16 %v466_v25, %v466_v25  ;;  %v1272_v29 = vpop.f32.mrb[11].mxu0 }
 0x899   :  { %v479_v30 = vsel %vm477_vm7, %v467_v28, 0 }
 0x89a   :  { %1274 = vmatpush3.bf16.msra.mxu1 %v479_v30 }
 0x89b   :  { %1287 = vmatprep.subr.bf16.mxu1 %v1442_v1 }
 0x89d   :  { %1276 = vmatmul.mubr.msk.bf16.vlgmr.msra.gmra.mrb[12].mxu1 %vm473_vm8, %v1584_v31 }
 0x89e   :  { %1288 = vmatpush3.bf16.msra.mxu1 %v1569_v16  ;;  %1289 = vmatprep.mubr.msk.bf16.mxu1 %vm1443_vm0, %v1442_v1 }
 0x89f   :  { %1299 = vmatprep.subr.bf16.mxu1 %v1442_v1 }
 0x970   :  { %v515_v32 = vpop.f32.mrb[12].mxu1 }
 0x971   :  { %v522_v33 = vmul.f32 %v515_v32, %v1533_v63  ;;  %v1277_v34 = vpop.f32.mrb[13].mxu1 }
 0x972   :  { %v518_v35 = vpop.f32.mrb[14].mxu1 }
 0x973   :  { %v523_v36 = vmul.f32 %v518_v35, %v1535_v2  ;;  %v1278_v37 = vpop.f32.mrb[15].mxu1 }
 0x975   :  { %v524_v38 = vpack.c.bf16 %v523_v36, %v522_v33 }
 0x977   :  { %1284 = vmatmul.mubr.msk.bf16.vlgmr.msra.gmra.mrb[12].mxu0 %vm164_vm2, %v524_v38 }
 0x978   :  { %1295 = vmatprep.mubr.msk.bf16.mxu0 %vm1443_vm0, %v1442_v1 }
 0xa4a   :  { %v562_v39 = vpop.f32.mrb[12].mxu0 }
 0xa4b   :  { %v1285_v40 = vpop.f32.mrb[13].mxu0  ;;  %v569_v41 = vsel %vm418_vm6, %v562_v39, -inf }
 0xa4c   :  { %570 = vmax.xlane.f32.xlu0 %v569_v41  ;;  %v565_v42 = vpop.f32.mrb[14].mxu0 }
 0xa4d   :  { %v1286_v43 = vpop.f32.mrb[15].mxu0  ;;  %v572_v44 = vsel %vm418_vm6, %v565_v42, -inf }
 0xa4e   :  { %573 = vmax.xlane.f32.xlu1 %v572_v44 }
 0xad9   :  { %v571_v45 = vpop.xlane.xlu0 %570 }
 0xada   :  { %v575_v46 = vsub.f32 %v562_v39, %v571_v45 }
 0xadb   :  { %v574_v47 = vpop.xlane.xlu1 %573 }
 0xadc   :  { %v577_v48 = vmul.f32 1.442695, %v575_v46  ;;  %v576_v49 = vsub.f32 %v565_v42, %v574_v47 }
 0xade   :  { %1398 = vpow2.f32 %v577_v48  ;;  %v579_v50 = vmul.f32 1.442695, %v576_v49 }
 0xae0   :  { %1400 = vpow2.f32 %v579_v50 }
 0xae8   :  { %v1399_v51 = vpop.eup %1398 }
 0xae9   :  { %v581_v52 = vsel %vm418_vm6, %v1399_v51, 0.0 }
 0xaea   :  { %v1401_v53 = vpop.eup %1400  ;;  %582 = vadd.xlane.f32.xlu0 %v581_v52 }
 0xaeb   :  { %v584_v54 = vsel %vm418_vm6, %v1401_v53, 0.0 }
 0xaee   :  { %585 = vadd.xlane.f32.xlu0 %v584_v54 }
 0xb77   :  { %v583_v55 = vpop.xlane.xlu0 %582 }
 0xb78   :  { %1402 = vrcp.f32 %v583_v55 }
 0xb7b   :  { %v586_v56 = vpop.xlane.xlu0 %585 }
 0xb7c   :  { %1404 = vrcp.f32 %v586_v56 }
 0xb82   :  { %v1403_v57 = vpop.eup %1402 }
 0xb83   :  { %v589_v59 = vmul.f32 %v1403_v57, %v1399_v51 }
 0xb86   :  { %v1405_v58 = vpop.eup %1404 }
 0xb87   :  { %v590_v60 = vmul.f32 %v1405_v58, %v1401_v53 }
 0xb89   :  { %v591_v61 = vpack.c.bf16 %v590_v60, %v589_v59 }
 0xb8b   :  { %1290 = vmatmul.mubr.msk.bf16.vlgmr.msra.gmra.mrb[16].mxu1 %vm418_vm6, %v591_v61 }
 0xb8c   :  { %1300 = vmatpush3.bf16.msra.mxu1 %v1552_v6  ;;  %1303 = vmatprep.mubr.msk.bf16.mxu1 %vm1443_vm0, %v1442_v1 }
 0xb8d   :  { %1301 = vmatprep.subr.bf16.mxu1 %v1442_v1 }
 0xb90   :  { %1302 = vmatpush3.bf16.msra.mxu1 %v1559_v7 }
 0xb91   :  { %1313 = vmatprep.subr.bf16.mxu1 %v1442_v1 }
 0xc5e   :  { %v629_v62 = vpop.f32.mrb[16].mxu1 }
 0xc5f   :  { %v636_v0 = vmul.f32 %v629_v62, %v1533_v63  ;;  %v1291_v3 = vpop.f32.mrb[17].mxu1 }
 0xc60   :  { %v632_v4 = vpop.f32.mrb[18].mxu1 }
 0xc61   :  { %v637_v8 = vmul.f32 %v632_v4, %v1535_v2  ;;  %v1292_v9 = vpop.f32.mrb[19].mxu1 }
 0xc63   :  { %v638_v10 = vpack.c.bf16 %v637_v8, %v636_v0 }
 0xc65   :  { %1294 = vmatpush3.bf16.msra.mxu0 %v638_v10 }
 0xc66   :  { %1307 = vmatprep.subr.bf16.mxu0 %v1442_v1 }
 0xc68   :  { %1296 = vmatmul.mubr.msk.bf16.vlgmr.msra.gmra.mrb[16].mxu0 %vm314_vm4, %v1542_v5 }
 0xc69   :  { %1308 = vmatpush3.bf16.msra.mxu0 %v1569_v16  ;;  %1309 = vmatprep.mubr.msk.bf16.mxu0 %vm1443_vm0, %v1442_v1 }
 0xc6a   :  { %1319 = vmatprep.subr.bf16.mxu0 %v1442_v1 }
 0xd3b   :  { %v673_v11 = vpop.f32.mrb[16].mxu0 }
 0xd3c   :  { %v679_v12 = vmul.f32 %v673_v11, %v673_v11  ;;  %v1297_v13 = vpop.f32.mrb[17].mxu0 }
 0xd3d   :  { %v676_v14 = vpop.f32.mrb[18].mxu0 }
 0xd3e   :  { %v680_v15 = vpack.c.bf16 %v679_v12, %v679_v12  ;;  %v1298_v17 = vpop.f32.mrb[19].mxu0 }
 0xd40   :  { %1304 = vmatmul.mubr.msk.bf16.vlgmr.msra.gmra.mrb[20].mxu1 %vm164_vm2, %v680_v15 }
 0xd41   :  { %1315 = vmatprep.mubr.msk.bf16.mxu1 %vm1443_vm0, %v1442_v1 }
 0xe13   :  { %v718_v18 = vpop.f32.mrb[20].mxu1 }
 0xe14   :  { %v719_v19 = vadd.f32 1e-07, %v718_v18  ;;  %v1305_v20 = vpop.f32.mrb[21].mxu1 }
 0xe15   :  { %v721_v21 = vpop.f32.mrb[22].mxu1  ;;  %v1383_v20 = vld [vmem:[%s1688_s1 + $0x48] sm:$0xff]  }
 0xe16   :  { %1406 = vrsqrt.f32 %v719_v19  ;;  %v1306_v22 = vpop.f32.mrb[23].mxu1 }
 0xe20   :  { %v1407_v23 = vpop.eup %1406 }
 0xe21   :  { %v725_v24 = vpack.c.bf16 %v1407_v23, %v1407_v23 }
 0xe23   :  { %1310 = vmatmul.mubr.msk.bf16.vlgmr.msra.gmra.mrb[20].mxu0 %vm418_vm6, %v725_v24 }
 0xe24   :  { %1320 = vmatpush3.bf16.msra.mxu0 %v1552_v6  ;;  %1323 = vmatprep.mubr.msk.bf16.mxu0 %vm1443_vm0, %v1442_v1 }
 0xe25   :  { %1321 = vmatprep.subr.bf16.mxu0 %v1442_v1 }
 0xe28   :  { %1322 = vmatpush3.bf16.msra.mxu0 %v1559_v7 }
 0xe29   :  { %1333 = vmatprep.subr.bf16.mxu0 %v1442_v1 }
 0xef6   :  { %v763_v25 = vpop.f32.mrb[20].mxu0 }
 0xef7   :  { %v769_v26 = vmul.f32 %v763_v25, %v673_v11  ;;  %v1311_v27 = vpop.f32.mrb[21].mxu0 }
 0xef8   :  { %v766_v28 = vpop.f32.mrb[22].mxu0 }
 0xef9   :  { %v770_v29 = vpack.c.bf16 %v769_v26, %v769_v26  ;;  %v1312_v30 = vpop.f32.mrb[23].mxu0  ;;  %v1171_v26 = vld [vmem:[%s1689_s2 + $0x2] ss:$0 sm:$0xff] }
 0xefb   :  { %v772_v32 = vsel %vm477_vm7, %v770_v29, 0 }
 0xefc   :  { %1314 = vmatpush3.bf16.msra.mxu1 %v772_v32 }
 0xefd   :  { %1327 = vmatprep.subr.bf16.mxu1 %v1442_v1 }
 0xeff   :  { %1316 = vmatmul.mubr.msk.bf16.vlgmr.msra.gmra.mrb[24].mxu1 %vm473_vm8, %v1584_v31 }
 0xf00   :  { %1328 = vmatpush3.bf16.msra.mxu1 %v1569_v16  ;;  %1329 = vmatprep.mubr.msk.bf16.mxu1 %vm1443_vm0, %v1442_v1 }
 0xf01   :  { %1339 = vmatprep.subr.bf16.mxu1 %v1442_v1 }
 0xfd2   :  { %v808_v33 = vpop.f32.mrb[24].mxu1 }
 0xfd3   :  { %v815_v34 = vmul.f32 %v808_v33, %v1533_v63  ;;  %v1317_v35 = vpop.f32.mrb[25].mxu1 }
 0xfd4   :  { %v811_v36 = vpop.f32.mrb[26].mxu1 }
 0xfd5   :  { %v816_v37 = vmul.f32 %v811_v36, %v1535_v2  ;;  %v1318_v38 = vpop.f32.mrb[27].mxu1 }
 0xfd7   :  { %v817_v39 = vpack.c.bf16 %v816_v37, %v815_v34 }
 0xfd9   :  { %1324 = vmatmul.mubr.msk.bf16.vlgmr.msra.gmra.mrb[24].mxu0 %vm164_vm2, %v817_v39 }
 0xfda   :  { %1335 = vmatprep.mubr.msk.bf16.mxu0 %vm1443_vm0, %v1442_v1 }
0x10ac   :  { %v855_v31 = vpop.f32.mrb[24].mxu0 }
0x10ad   :  { %v1325_v40 = vpop.f32.mrb[25].mxu0  ;;  %v862_v41 = vsel %vm418_vm6, %v855_v31, -inf }
0x10ae   :  { %863 = vmax.xlane.f32.xlu1 %v862_v41  ;;  %v858_v42 = vpop.f32.mrb[26].mxu0 }
0x10af   :  { %v1326_v43 = vpop.f32.mrb[27].mxu0  ;;  %v865_v44 = vsel %vm418_vm6, %v858_v42, -inf }
0x10b0   :  { %866 = vmax.xlane.f32.xlu0 %v865_v44 }
0x113b   :  { %v864_v45 = vpop.xlane.xlu1 %863 }
0x113c   :  { %v868_v46 = vsub.f32 %v855_v31, %v864_v45 }
0x113d   :  { %v867_v47 = vpop.xlane.xlu0 %866 }
0x113e   :  { %v870_v48 = vmul.f32 1.442695, %v868_v46  ;;  %v869_v49 = vsub.f32 %v858_v42, %v867_v47 }
0x1140   :  { %1408 = vpow2.f32 %v870_v48  ;;  %v872_v50 = vmul.f32 1.442695, %v869_v49 }
0x1142   :  { %1410 = vpow2.f32 %v872_v50 }
0x114a   :  { %v1409_v51 = vpop.eup %1408 }
0x114b   :  { %v874_v52 = vsel %vm418_vm6, %v1409_v51, 0.0 }
0x114c   :  { %v1411_v53 = vpop.eup %1410  ;;  %875 = vadd.xlane.f32.xlu1 %v874_v52 }
0x114d   :  { %v877_v54 = vsel %vm418_vm6, %v1411_v53, 0.0 }
0x114e   :  { %878 = vadd.xlane.f32.xlu0 %v877_v54 }
0x11d9   :  { %v876_v55 = vpop.xlane.xlu1 %875 }
0x11da   :  { %1412 = vrcp.f32 %v876_v55 }
0x11db   :  { %v879_v56 = vpop.xlane.xlu0 %878 }
0x11dc   :  { %1414 = vrcp.f32 %v879_v56 }
0x11e4   :  { %v1413_v57 = vpop.eup %1412 }
0x11e5   :  { %v882_v59 = vmul.f32 %v1413_v57, %v1409_v51 }
0x11e6   :  { %v1415_v58 = vpop.eup %1414 }
0x11e7   :  { %v883_v60 = vmul.f32 %v1415_v58, %v1411_v53 }
0x11e9   :  { %v884_v61 = vpack.c.bf16 %v883_v60, %v882_v59 }
0x11eb   :  { %1330 = vmatmul.mubr.msk.bf16.vlgmr.msra.gmra.mrb[28].mxu1 %vm418_vm6, %v884_v61 }
0x11ec   :  { %1340 = vmatpush3.bf16.msra.mxu1 %v1552_v6  ;;  %1343 = vmatprep.mubr.msk.bf16.mxu1 %vm1443_vm0, %v1442_v1 }
0x11ed   :  { %1341 = vmatprep.subr.bf16.mxu1 %v1442_v1 }
0x11f0   :  { %1342 = vmatpush3.bf16.msra.mxu1 %v1559_v7 }
0x11f1   :  { %1353 = vmatprep.subr.bf16.mxu1 %v1442_v1 }
0x12be   :  { %v922_v62 = vpop.f32.mrb[28].mxu1 }
0x12bf   :  { %v929_v0 = vmul.f32 %v922_v62, %v1533_v63  ;;  %v1331_v3 = vpop.f32.mrb[29].mxu1 }
0x12c0   :  { %v925_v4 = vpop.f32.mrb[30].mxu1 }
0x12c1   :  { %v930_v8 = vmul.f32 %v925_v4, %v1535_v2  ;;  %v1332_v9 = vpop.f32.mrb[31].mxu1  ;;  %v1382_v2 = vld [vmem:[%s1688_s1 + $0x40] sm:$0xff]   ;;  %s1418_s1 = scalar_lea.vmem %s1132_s26, 32 }
0x12c2   :  { %p1419_p0 = scmp.ne.s32.totalorder %s1132_s26, %s1418_s1  ;;  %p1424_p2 = scmp.lt.s32.totalorder %s1418_s1, %s1418_s1 }
0x12c3   :  { %v931_v10 = vpack.c.bf16 %v930_v8, %v929_v0 }
0x12c4   :  { %p1425_p3 = por %p1424_p2, %p1423_p1 }
0x12c5   :  { %1334 = vmatpush3.bf16.msra.mxu0 %v931_v10 }
0x12c6   :  { %1347 = vmatprep.subr.bf16.mxu0 %v1442_v1  ;;  %p1426_p4 = pnand %p1425_p3, %p1419_p0 }
0x12c8   :  { %1336 = vmatmul.mubr.msk.bf16.vlgmr.msra.gmra.mrb[28].mxu0 %vm314_vm4, %v1542_v5 }
0x12c9   :  { %1348 = vmatpush3.bf16.msra.mxu0 %v1569_v16  ;;  %1349 = vmatprep.mubr.msk.bf16.mxu0 %vm1443_vm0, %v1442_v1 }
0x139b   :  { %v966_v6 = vpop.f32.mrb[28].mxu0 }
0x139c   :  { %v972_v7 = vmul.f32 %v966_v6, %v966_v6  ;;  %v1337_v63 = vpop.f32.mrb[29].mxu0 }
0x139d   :  { %v969_v11 = vpop.f32.mrb[30].mxu0 }
0x139e   :  { %v973_v12 = vpack.c.bf16 %v972_v7, %v972_v7  ;;  %v1338_v13 = vpop.f32.mrb[31].mxu0 }
0x13a0   :  { %1344 = vmatmul.mubr.msk.bf16.vlgmr.msra.gmra.mrb[32].mxu1 %vm164_vm2, %v973_v12 }
0x13a1   :  { %1357 = vmatprep.mubr.msk.bf16.mxu1 %vm1443_vm0, %v1442_v1  ;;  %1354 = vmatpush3.bf16.msra.mxu1 %v1382_v2 }
0x13a2   :  { %1355 = vmatprep.subr.bf16.mxu1 %v1442_v1 }
0x13a5   :  { %1356 = vmatpush3.bf16.msra.mxu1 %v1383_v20 }
0x1473   :  { %v1011_v5 = vpop.f32.mrb[32].mxu1 }
0x1474   :  { %v1012_v16 = vadd.f32 1e-07, %v1011_v5  ;;  %v1345_v14 = vpop.f32.mrb[33].mxu1 }
0x1475   :  { %v1014_v15 = vpop.f32.mrb[34].mxu1 }
0x1476   :  { %1416 = vrsqrt.f32 %v1012_v16  ;;  %v1346_v17 = vpop.f32.mrb[35].mxu1 }
0x1480   :  { %v1417_v18 = vpop.eup %1416 }
0x1481   :  { %v1018_v19 = vpack.c.bf16 %v1417_v18, %v1417_v18 }
0x1483   :  { %1350 = vmatmul.mubr.msk.bf16.vlgmr.msra.gmra.mrb[32].mxu0 %vm418_vm6, %v1018_v19 }
0x1556   :  { %v1056_v21 = vpop.f32.mrb[32].mxu0 }
0x1557   :  { %v1062_v22 = vmul.f32 %v1056_v21, %v966_v6  ;;  %v1351_v23 = vpop.f32.mrb[33].mxu0 }
0x1558   :  { %v1059_v24 = vpop.f32.mrb[34].mxu0 }
0x1559   :  { %v1063_v1 = vpack.c.bf16 %v1062_v22, %v1062_v22  ;;  %v1352_v25 = vpop.f32.mrb[35].mxu0 }
0x155b   :  { %1358 = vmatmul.mubr.msk.bf16.vlgmr.msra.gmra.mrb[36].mxu1 %vm164_vm2, %v1063_v1 }
0x162e   :  { %v1117_v27 = vpop.f32.mrb[36].mxu1 }
0x162f   :  { %v1118_v28 = vadd.f32 %v1171_v26, %v1117_v27  ;;  %v1359_v29 = vpop.f32.mrb[37].mxu1 }
0x1630   :  { %v1120_v30 = vpop.f32.mrb[38].mxu1 }
0x1631   :  { %v1360_v32 = vpop.f32.mrb[39].mxu1  ;;  %1124 = vst.msk [vmem:[#allocation2] sm:$0x3] %vm1123_vm9, %v1118_v28 }
0x1632   :  { %1429 = shalt.err (!%p1426_p4)
}
0x1633   :  { %s1430_s2 = scalar_lea.hbm %s1690_s3, 32 }
0x1634   :  { %p1431_p5 = scmp.ne.s32.totalorder %s1690_s3, %s1430_s2  ;;  %p1434_p6 = scmp.lt.u32.totalorder %s1430_s2, %s1690_s3 }
0x1636   :  { %p1436_p7 = pnand %p1434_p6, %p1431_p5 }
0x1638   :  { %1439 = shalt.err (!%p1436_p7)
}
0x1639   :  { %1134 = dma.vmem_to_hbm [thread:$0]  %s1132_s26, 32, %s1690_s3, [#allocation3]  }
0x163a   :  { %1440 = dma.done.wait [#allocation3], 32  }
0x163b   :  { %1441 = vsyncadd [#allocation3], 4294967264 }
0x163c   :  { %1138 = vsyncpa [#allocation3], 1 }

</bundles_post_ra>
